<compile_context>
chip_gen: v7x
topology: tpu7x:2x2x1
jax: 0.10.0
libtpu: 0.0.40
codegen_flags: <defaults>
</compile_context>

<pallas_src>
import functools

import jax
import jax.numpy as jnp
from jax.experimental import pallas as pl
from jax.experimental.pallas import tpu as pltpu


# ---------------------------------------------------------------------------
# Kernels
# ---------------------------------------------------------------------------

def _fused_kernel(x_ref, w_ref, b_ref, o_ref, *, precision):
    # x_ref: (TB, K)   w_ref: (K, N_pad) block-diag, resident   b_ref: (1, N_pad)
    # o_ref: (TB, N_pad)
    acc = jnp.dot(x_ref[...], w_ref[...],
                  preferred_element_type=jnp.float32, precision=precision)
    o_ref[...] = (acc + b_ref[...].astype(jnp.float32)).astype(o_ref.dtype)


def _grouped_kernel(x_ref, w_ref, b_ref, o_ref, *, n, d_in, d_out, n_pad, precision):
    # x_ref: (TB, n*d_in)   w_ref: (n, d_in, d_out) compact, resident
    # b_ref: (1, N_pad)     o_ref: (TB, N_pad)
    tb = x_ref.shape[0]
    for i in range(n):  # static unroll over experts
        xi = x_ref[:, i * d_in:(i + 1) * d_in]
        acc = jnp.dot(xi, w_ref[i],
                      preferred_element_type=jnp.float32, precision=precision)
        acc = acc + b_ref[:, i * d_out:(i + 1) * d_out].astype(jnp.float32)
        o_ref[:, i * d_out:(i + 1) * d_out] = acc.astype(o_ref.dtype)
    if n_pad > n * d_out:  # keep the padded tail defined; sliced off in wrapper
        o_ref[:, n * d_out:] = jnp.zeros((tb, n_pad - n * d_out), o_ref.dtype)


# ---------------------------------------------------------------------------
# Sizing helpers
# ---------------------------------------------------------------------------

def _round_up(x, m):
    return ((x + m - 1) // m) * m


def _vmem_capacity_bytes():
    try:
        return int(pltpu.get_tpu_info().vmem_capacity_bytes)
    except Exception:
        return 64 * 1024 * 1024  # conservative: v7x per-TensorCore VMEM


def _mxu_tile():
    try:
        kind = jax.devices()[0].device_kind.lower()
    except Exception:
        return 128
    return 256 if ("v6" in kind or "v7" in kind) else 128  # v5e/v5p/v4 -> 128


def _select_path(n, d_in, d_out, K, N_pad, itemsize, budget):
    """Fused block-diag only while its extra zero-FLOPs and VMEM are free."""
    mxu = _mxu_tile()
    fused_passes = -(-K // mxu) * (-(-N_pad // mxu))
    grouped_passes = n * (-(-d_in // mxu)) * (-(-d_out // mxu))
    fused_w_bytes = 2 * K * N_pad * itemsize  # double-buffered resident weight
    if fused_passes <= grouped_passes and fused_w_bytes <= budget // 2:
        return "fused"
    return "grouped"


def _choose_b_tile(B, bytes_per_row, resident_bytes, sublane_min, budget_bytes):
    """Pick the batch-tile size (rows per grid step)."""
    if B <= 2 * sublane_min:
        return B  # too small to split; full-array block is always legal
    avail = max(budget_bytes - resident_bytes, bytes_per_row * sublane_min)
    # Aim for >= 4 grid steps (v7x megacore sharding + DMA/compute overlap)
    # while keeping tiles large enough to amortize ~0.35 us/step overhead.
    target = min(512, max(sublane_min, -(-B // 4)))
    tb = min(target, avail // bytes_per_row, B)
    tb = max(sublane_min, (tb // sublane_min) * sublane_min)
    return int(tb)


# ---------------------------------------------------------------------------
# Wrapper
# ---------------------------------------------------------------------------

def nlinear(x, weight, bias=None, *, force_path=None):
    """x: (B, n, d_in), weight: (n, d_in, d_out), bias: (n, d_out) -> (B, n, d_out)."""
    assert x.ndim == 3
    B, n, d_in = x.shape
    _, _, d_out = weight.shape
    if bias is None:
        bias = jnp.zeros((n, d_out), x.dtype)

    K, N = n * d_in, n * d_out
    N_pad = _round_up(N, 128)                      # lane-dense output stores
    itemsize = jnp.dtype(x.dtype).itemsize
    sublane_min = max(8, 32 // itemsize)           # 8 f32 / 16 bf16 / 32 int8

    capacity = _vmem_capacity_bytes()
    budget = int(0.45 * capacity)                  # generation-aware VMEM budget

    precision = jax.lax.Precision.HIGHEST if x.dtype == jnp.float32 else None

    x2 = x.reshape(B, K)                                           # free view
    bias_pad = jnp.pad(bias.reshape(1, N), ((0, 0), (0, N_pad - N)))

    path = force_path or _select_path(n, d_in, d_out, K, N_pad, itemsize, budget)
    bytes_per_row = 2 * (K + N_pad) * itemsize     # double-buffered x + out rows

    if path == "fused":
        # Block-diagonal weight built with a single vectorized op (no n-step
        # dynamic-update-slice loop); DMA'd once per call and VMEM-resident.
        eye = jnp.eye(n, dtype=weight.dtype)
        w_bd = (weight[:, :, None, :] * eye[:, None, :, None]).reshape(K, N)
        w_bd = jnp.pad(w_bd, ((0, 0), (0, N_pad - N)))
        resident = 2 * (K * N_pad + N_pad) * itemsize   # 2x: default double-buffer
        tb = _choose_b_tile(B, bytes_per_row, resident, sublane_min, budget)
        kernel = functools.partial(_fused_kernel, precision=precision)
        in_specs = [
            pl.BlockSpec((tb, K), lambda b: (b, 0)),          # streamed x tile
            pl.BlockSpec((K, N_pad), lambda b: (0, 0)),       # resident weight
            pl.BlockSpec((1, N_pad), lambda b: (0, 0)),       # resident bias
        ]
        operands = (x2, w_bd, bias_pad)
    else:  # "grouped": compact weight, per-expert dots unrolled in-kernel
        resident = 2 * (n * d_in * d_out + N_pad) * itemsize
        tb = _choose_b_tile(B, bytes_per_row, resident, sublane_min, budget)
        kernel = functools.partial(_grouped_kernel, n=n, d_in=d_in, d_out=d_out,
                                   n_pad=N_pad, precision=precision)
        in_specs = [
            pl.BlockSpec((tb, K), lambda b: (b, 0)),              # streamed x tile
            pl.BlockSpec((n, d_in, d_out), lambda b: (0, 0, 0)),  # resident weight
            pl.BlockSpec((1, N_pad), lambda b: (0, 0)),           # resident bias
        ]
        operands = (x2, weight, bias_pad)

    footprint = resident + bytes_per_row * tb
    vmem_limit = int(min(capacity - (2 << 20),
                         max(footprint + (8 << 20), 32 << 20)))

    out2 = pl.pallas_call(
        kernel,
        out_shape=jax.ShapeDtypeStruct((B, N_pad), x.dtype),
        grid_spec=pltpu.PrefetchScalarGridSpec(
            num_scalar_prefetch=0,
            grid=(pl.cdiv(B, tb),),
            in_specs=in_specs,
            out_specs=pl.BlockSpec((tb, N_pad), lambda b: (b, 0)),
        ),
        compiler_params=pltpu.CompilerParams(
            # 1-D grid over B tiles; no cross-step state in either kernel, so
            # "parallel" is safe and lets v7x's two TensorCores shard it.
            dimension_semantics=("parallel",),
            vmem_limit_bytes=vmem_limit,
        ),
    )(*operands)

    return out2[:, :N].reshape(B, n, d_out)   # slice is a no-op when N % 128 == 0


def init_params(key, n, d_in, d_out, dtype=jnp.float32):
    """Deterministic init mimicking nn.Linear defaults (uniform +/- 1/sqrt(d_in))."""
    kw, kb = jax.random.split(key)
    bound = 1.0 / (d_in ** 0.5)
    weight = jax.random.uniform(kw, (n, d_in, d_out), dtype, -bound, bound)
    bias = jax.random.uniform(kb, (n, d_out), dtype, -bound, bound)
    return weight, bias


if __name__ == "__main__":
    key = jax.random.PRNGKey(0)
    kx, kp = jax.random.split(key)

    B, n, d_in, d_out = 32, 4, 32, 16
    x = jax.random.normal(kx, (B, n, d_in), jnp.float32)
    weight, bias = init_params(kp, n, d_in, d_out)

    # Reference: exactly the PyTorch forward math, pure f32 on the VPU.
    ref = jnp.sum(x[..., None] * weight[None], axis=-2) + bias[None]

    fn = jax.jit(nlinear, static_argnames=("force_path",))

    # Path 1: fused block-diagonal kernel (auto-selected at these small sizes).
    out_fused = fn(x, weight, bias)
    jax.block_until_ready(out_fused)
    assert out_fused.shape == (B, n, d_out)
    assert jnp.allclose(out_fused, ref, atol=5e-5, rtol=1e-5)

    # Path 2: grouped per-expert kernel (forced, so both kernels are exercised).
    out_grouped = fn(x, weight, bias, force_path="grouped")
    jax.block_until_ready(out_grouped)
    assert out_grouped.shape == (B, n, d_out)
    assert jnp.allclose(out_grouped, ref, atol=5e-5, rtol=1e-5)

    print("KERNEL_OK")
</pallas_src>

<mosaic_0001>
module attributes {stable_mosaic.version = 11 : i64} {
  func.func @_fused_kernel(%arg0: i32, %arg1: memref<8x128xf32, #tpu.memory_space<vmem>>, %arg2: memref<128x128xf32, #tpu.memory_space<vmem>>, %arg3: memref<1x128xf32, #tpu.memory_space<vmem>>, %arg4: memref<8x128xf32, #tpu.memory_space<vmem>>) attributes {dimension_semantics = [#tpu.dimension_semantics<parallel>], iteration_bounds = array<i64: 4>, scalar_prefetch = 0 : i64, scratch_operands = 0 : i64, tpu.core_type = #tpu.core_type<tc>, window_params = [{transform_indices = @transform_0, window_bounds = array<i64: 8, 128>}, {pipeline_mode = #tpu.pipeline_mode<synchronous>, transform_indices = @transform_1, window_bounds = array<i64: 128, 128>}, {pipeline_mode = #tpu.pipeline_mode<synchronous>, transform_indices = @transform_2, window_bounds = array<i64: 1, 128>}, {transform_indices = @transform_3, window_bounds = array<i64: 8, 128>}]} {
    %c0 = arith.constant 0 : index
    %c0_0 = arith.constant 0 : index
    %0 = vector.load %arg1[%c0, %c0_0] : memref<8x128xf32, #tpu.memory_space<vmem>>, vector<8x128xf32>
    %c0_1 = arith.constant 0 : index
    %c0_2 = arith.constant 0 : index
    %1 = vector.load %arg2[%c0_1, %c0_2] : memref<128x128xf32, #tpu.memory_space<vmem>>, vector<128x128xf32>
    %cst = arith.constant dense<0.000000e+00> : vector<8x128xf32>
    %2 = tpu.matmul %0, %1, %cst {dimension_numbers = #tpu.dot_dimension_numbers<[1], [0], [0], [1], [0, 0, 1, 1], [], []>, precision = #tpu.contract_precision<fp32>} : vector<8x128xf32>, vector<128x128xf32>, vector<8x128xf32> -> vector<8x128xf32>
    %c0_3 = arith.constant 0 : index
    %c0_4 = arith.constant 0 : index
    %3 = vector.load %arg3[%c0_3, %c0_4] : memref<1x128xf32, #tpu.memory_space<vmem>>, vector<1x128xf32>
    %4 = vector.broadcast %3 : vector<1x128xf32> to vector<8x128xf32>
    %5 = arith.addf %2, %4 : vector<8x128xf32>
    %c0_5 = arith.constant 0 : index
    %c0_6 = arith.constant 0 : index
    %6 = vector.load %arg4[%c0_5, %c0_6] : memref<8x128xf32, #tpu.memory_space<vmem>>, vector<8x128xf32>
    tpu.vector_store %arg4[%c0_5, %c0_6], %5 {strides = array<i32>} : memref<8x128xf32, #tpu.memory_space<vmem>>, vector<8x128xf32>,
    return
  }
  func.func @transform_0(%arg0: i32) -> (i32, i32) {
    %c0_i32 = arith.constant 0 : i32
    %c0_i32_0 = arith.constant 0 : i32
    return %arg0, %c0_i32 : i32, i32
  }
  func.func @transform_1(%arg0: i32) -> (i32, i32) {
    %c0_i32 = arith.constant 0 : i32
    %c0_i32_0 = arith.constant 0 : i32
    %c0_i32_1 = arith.constant 0 : i32
    return %c0_i32, %c0_i32_0 : i32, i32
  }
  func.func @transform_2(%arg0: i32) -> (i32, i32) {
    %c0_i32 = arith.constant 0 : i32
    %c0_i32_0 = arith.constant 0 : i32
    %c0_i32_1 = arith.constant 0 : i32
    return %c0_i32, %c0_i32_0 : i32, i32
  }
  func.func @transform_3(%arg0: i32) -> (i32, i32) {
    %c0_i32 = arith.constant 0 : i32
    %c0_i32_0 = arith.constant 0 : i32
    return %arg0, %c0_i32 : i32, i32
  }
}

</mosaic_0001>

<bundles_post_ra>
// kernel: nlinear.1
= control target key start
LH: loop header
LB: loop body
LE: loop exit
PB: predicated region body
PF: predicated region fallthrough
CT: control target
= control target key end

     0   :  { %s1403_s12 = smov 0   ;;  %s1741_s0 = inlined_call_operand.vmem [shape: f32[32,128], index: 0, kind: input, shape index: {}]   ;;  %s1742_s1 = inlined_call_operand.vmem [shape: f32[128,128], index: 1, kind: input, shape index: {}]   ;;  %s1743_s2 = inlined_call_operand.vmem [shape: f32[1,128], index: 2, kind: input, shape index: {}]   ;;  %s1744_s3 = inlined_call_operand.vmem [shape: f32[32,128], index: 3, kind: output, shape index: {}]  }
   0x1 LB: > { %s885_s13 = sadd.s32 4294967295, %s1378_s12   ;;  %p889_p0 = scmp.ge.s32.totalorder %s1378_s12, 1  ;;  %s1378_s12 = sphi %s1403_s12, %s13_s12  }
   0x2   : > { %p136_p1 = scmp.lt.s32.totalorder %s1378_s12, 5 }
   0x4   : > { %p137_p2 = pnand %p889_p0, %p136_p1 }
   0x5   : > { %v167_v0 = vld [vmem:[%s1742_s1] sm:$0xff] (!%p137_p2)  ;;  %v168_v1 = vld [vmem:[%s1742_s1 + $0x8] sm:$0xff] (!%p137_p2)  ;;  %v169_v2 = vld [vmem:[%s1742_s1 + $0x10] sm:$0xff] (!%p137_p2)  ;;  %v1380_v3 = vmov (!%p137_p2), 0.0|0.0   ;;  %vm1381_vm0 = vmmov (!%p137_p2), 0   ;;  %v1382_v11 = vmov (!%p137_p2), 0.0  }
   0x6   : > { %140 = sbr.rel (%p137_p2) target bundleno = 322 (0x142), region = 32  ;;  %1207 = vmatprep.subr.bf16.mxu1 (!%p137_p2), %v1380_v3  ;;  %1279 = vmatprep.subr.bf16.mxu0 (!%p137_p2), %v1380_v3  ;;  %v191_v4 = vand.u32 (!%p137_p2), 4294901760, %v167_v0  ;;  %v194_v5 = vand.u32 (!%p137_p2), 4294901760, %v168_v1  ;;  %v170_v6 = vld [vmem:[%s1742_s1 + $0x18] sm:$0xff] (!%p137_p2)  ;;  %v197_v7 = vand.u32 (!%p137_p2), 4294901760, %v169_v2  ;;  %v1428_v9 = vld [vmem:[%s1742_s1 + $0x20] sm:$0xff] (!%p137_p2) }
   0x7   : > { %v200_v8 = vand.u32 (!%p137_p2), 4294901760, %v170_v6  ;;  %v1433_v10 = vld [vmem:[%s1742_s1 + $0x28] sm:$0xff] (!%p137_p2)  ;;  %1029 = vmatprep.mubr.msk.f32.mxu1 (!%p137_p2), %vm1381_vm0, %v1382_v11  ;;  %1134 = vmatprep.mubr.msk.f32.mxu0 (!%p137_p2), %vm1381_vm0, %v1382_v11  ;;  %p158_p3 = scmp.lt.s32.totalorder (!%p137_p2), %s885_s13, 3  ;;  %v203_v14 = vand.u32 (!%p137_p2), 4294901760, %v1428_v9  ;;  %v1454_v16 = vld [vmem:[%s1742_s1 + $0x30] sm:$0xff] (!%p137_p2)  ;;  %v1459_v17 = vld [vmem:[%s1742_s1 + $0x38] sm:$0xff] (!%p137_p2) }
   0x8   : > { %v1439_v12 = vpack.c.bf16 (!%p137_p2), %v194_v5, %v191_v4  ;;  %v206_v15 = vand.u32 (!%p137_p2), 4294901760, %v1433_v10  ;;  %v209_v19 = vand.u32 (!%p137_p2), 4294901760, %v1454_v16  ;;  %v212_v20 = vand.u32 (!%p137_p2), 4294901760, %v1459_v17  ;;  %v1473_v21 = vld [vmem:[%s1742_s1 + $0x40] sm:$0xff] (!%p137_p2)  ;;  %v1478_v22 = vld [vmem:[%s1742_s1 + $0x48] sm:$0xff] (!%p137_p2)  ;;  %v1496_v27 = vld [vmem:[%s1742_s1 + $0x50] sm:$0xff] (!%p137_p2) }
   0x9   : > { %v1443_v13 = vpack.c.bf16 (!%p137_p2), %v200_v8, %v197_v7  ;;  %v215_v24 = vand.u32 (!%p137_p2), 4294901760, %v1473_v21  ;;  %v218_v25 = vand.u32 (!%p137_p2), 4294901760, %v1478_v22  ;;  %v1501_v28 = vld [vmem:[%s1742_s1 + $0x58] sm:$0xff] (!%p137_p2)  ;;  %v1503_v29 = vsub.f32 (!%p137_p2), %v167_v0, %v191_v4  ;;  %v1518_v35 = vld [vmem:[%s1742_s1 + $0x60] sm:$0xff] (!%p137_p2)  ;;  %v1525_v36 = vld [vmem:[%s1742_s1 + $0x68] sm:$0xff] (!%p137_p2) }
   0xa   : > { %1209 = vmatpush3.bf16.msra.mxu1 (!%p137_p2), %v1439_v12  ;;  %1281 = vmatpush3.bf16.msra.mxu0 (!%p137_p2), %v1439_v12  ;;  %v1464_v18 = vpack.c.bf16 (!%p137_p2), %v206_v15, %v203_v14  ;;  %v1487_v23 = vpack.c.bf16 (!%p137_p2), %v212_v20, %v209_v19  ;;  %v1507_v31 = vsub.f32 (!%p137_p2), %v168_v1, %v194_v5  ;;  %v221_v33 = vand.u32 (!%p137_p2), 4294901760, %v1496_v27  ;;  %v1547_v43 = vld [vmem:[%s1742_s1 + $0x70] sm:$0xff] (!%p137_p2)  ;;  %v1552_v44 = vld [vmem:[%s1742_s1 + $0x78] sm:$0xff] (!%p137_p2) }
   0xb   : > { %1210 = vmatprep.subr.bf16.mxu1 (!%p137_p2), %v1380_v3  ;;  %1282 = vmatprep.subr.bf16.mxu0 (!%p137_p2), %v1380_v3  ;;  %v1511_v32 = vpack.c.bf16 (!%p137_p2), %v218_v25, %v215_v24  ;;  %v224_v34 = vand.u32 (!%p137_p2), 4294901760, %v1501_v28  ;;  %v1527_v37 = vsub.f32 (!%p137_p2), %v169_v2, %v197_v7  ;;  %v1529_v38 = vsub.f32 (!%p137_p2), %v170_v6, %v200_v8 }
   0xc   : > { %v227_v39 = vand.u32 (!%p137_p2), 4294901760, %v1518_v35  ;;  %v230_v42 = vand.u32 (!%p137_p2), 4294901760, %v1525_v36  ;;  %v284_v45 = vand.u32 (!%p137_p2), 4294901760, %v1503_v29  ;;  %v291_v46 = vand.u32 (!%p137_p2), 4294901760, %v1507_v31 }
   0xd   : > { %s1746_s13 = smov (!%p158_p3, %s885_s13), 3  ;;  %v1541_v41 = vpack.c.bf16 %v224_v34, %v221_v33  ;;  %v1559_v47 = vsub.f32 %v1428_v9, %v203_v14  ;;  %v1562_v48 = vsub.f32 %v1433_v10, %v206_v15  ;;  %v233_v49 = vand.u32 4294901760, %v1547_v43 }
   0xe   : > { %s890_s30 = sshll.u32 %s1746_s13, 3  ;;  %1212 = vmatpush3.bf16.msra.mxu1 %v1443_v13  ;;  %1284 = vmatpush3.bf16.msra.mxu0 %v1443_v13  ;;  %v236_v50 = vand.u32 4294901760, %v1552_v44  ;;  %v298_v52 = vand.u32 4294901760, %v1527_v37  ;;  %v1574_v53 = vpack.c.bf16 %v230_v42, %v227_v39  ;;  %v285_v54 = vsub.f32 %v1503_v29, %v284_v45 }
   0xf   : > { %1213 = vmatprep.subr.bf16.mxu1 %v1380_v3  ;;  %1285 = vmatprep.subr.bf16.mxu0 %v1380_v3  ;;  %s161_s10 = scalar_lea.vmem %s1741_s0, %s890_s30  ;;  %v292_v55 = vsub.f32 %v1507_v31, %v291_v46  ;;  %v305_v56 = vand.u32 4294901760, %v1529_v38  ;;  %v1582_v57 = vsub.f32 %v1454_v16, %v209_v19  ;;  %v1585_v58 = vsub.f32 %v1459_v17, %v212_v20  ;;  %s165_s29 = scalar_lea.vmem %s1744_s3, %s890_s30 }
  0x10   : > { %v166_v26 = vld [vmem:[%s161_s10] sm:$0xff]  ;;  %v299_v60 = vsub.f32 %v1527_v37, %v298_v52  ;;  %v312_v61 = vand.u32 4294901760, %v1559_v47  ;;  %v319_v62 = vand.u32 4294901760, %v1562_v48  ;;  %v1597_v63 = vpack.c.bf16 %v236_v50, %v233_v49 }
  0x11   : > { %v1505_v30 = vand.u32 4294901760, %v166_v26  ;;  %v286_v0 = vand.u32 4294901760, %v285_v54  ;;  %v293_v1 = vand.u32 4294901760, %v292_v55  ;;  %v306_v2 = vsub.f32 %v1529_v38, %v305_v56 }
  0x12   : > { %1215 = vmatpush3.bf16.msra.mxu1 %v1464_v18  ;;  %1287 = vmatpush3.bf16.msra.mxu0 %v1464_v18  ;;  %v1603_v4 = vsub.f32 %v1473_v21, %v215_v24  ;;  %v1606_v5 = vsub.f32 %v1478_v22, %v218_v25  ;;  %v1304_v6 = vpack.c.bf16 %v291_v46, %v284_v45  ;;  %v300_v8 = vand.u32 4294901760, %v299_v60 }
  0x13   : > { %1216 = vmatprep.subr.bf16.mxu1 %v1380_v3  ;;  %1288 = vmatprep.subr.bf16.mxu0 %v1380_v3  ;;  %v1533_v40 = vsub.f32 %v166_v26, %v1505_v30  ;;  %v313_v9 = vsub.f32 %v1559_v47, %v312_v61  ;;  %v320_v10 = vsub.f32 %v1562_v48, %v319_v62  ;;  %v307_v15 = vand.u32 4294901760, %v306_v2 }
  0x14   : > { %v1232_v14 = vpack.c.bf16 %v293_v1, %v286_v0  ;;  %v326_v16 = vand.u32 4294901760, %v1582_v57  ;;  %v333_v17 = vand.u32 4294901760, %v1585_v58  ;;  %v1619_v19 = vsub.f32 %v1496_v27, %v221_v33 }
  0x15   : > { %v273_v51 = vand.u32 4294901760, %v1533_v40  ;;  %v1624_v20 = vsub.f32 %v1501_v28, %v224_v34  ;;  %v1307_v21 = vpack.c.bf16 %v305_v56, %v298_v52  ;;  %v314_v22 = vand.u32 4294901760, %v313_v9 }
  0x16   : > { %1218 = vmatpush3.bf16.msra.mxu1 %v1487_v23  ;;  %1290 = vmatpush3.bf16.msra.mxu0 %v1487_v23  ;;  %v321_v24 = vand.u32 4294901760, %v320_v10  ;;  %v340_v25 = vand.u32 4294901760, %v1603_v4  ;;  %v1235_v26 = vpack.c.bf16 %v307_v15, %v300_v8  ;;  %v327_v45 = vsub.f32 %v1582_v57, %v326_v16 }
  0x17   : > { %1219 = vmatprep.subr.bf16.mxu1 %v1380_v3  ;;  %1291 = vmatprep.subr.bf16.mxu0 %v1380_v3  ;;  %v274_v59 = vsub.f32 %v1533_v40, %v273_v51  ;;  %v334_v27 = vsub.f32 %v1585_v58, %v333_v17  ;;  %v347_v33 = vand.u32 4294901760, %v1606_v5  ;;  %v1635_v28 = vsub.f32 %v1518_v35, %v227_v39 }
  0x18   : > { %v1640_v34 = vsub.f32 %v1525_v36, %v230_v42  ;;  %v1238_v46 = vpack.c.bf16 %v321_v24, %v314_v22  ;;  %v341_v52 = vsub.f32 %v1603_v4, %v340_v25  ;;  %v354_v54 = vand.u32 4294901760, %v1619_v19 }
  0x19   : > { %v275_v7 = vand.u32 4294901760, %v274_v59  ;;  %v328_v35 = vand.u32 4294901760, %v327_v45  ;;  %v335_v39 = vand.u32 4294901760, %v334_v27  ;;  %v348_v55 = vsub.f32 %v1606_v5, %v347_v33 }
  0x1a   : > { %1221 = vmatpush3.bf16.msra.mxu1 %v1511_v32  ;;  %1293 = vmatpush3.bf16.msra.mxu0 %v1511_v32  ;;  %v361_v36 = vand.u32 4294901760, %v1624_v20  ;;  %v1655_v42 = vsub.f32 %v1547_v43, %v233_v49  ;;  %v1660_v56 = vsub.f32 %v1552_v44, %v236_v50  ;;  %v1313_v59 = vpack.c.bf16 %v333_v17, %v326_v16 }
  0x1b   : > { %1222 = vmatprep.subr.bf16.mxu1 %v1380_v3  ;;  %1294 = vmatprep.subr.bf16.mxu0 %v1380_v3  ;;  %v342_v60 = vand.u32 4294901760, %v341_v52  ;;  %v1241_v0 = vpack.c.bf16 %v335_v39, %v328_v35  ;;  %v349_v1 = vand.u32 4294901760, %v348_v55  ;;  %v375_v43 = vand.u32 4294901760, %v1640_v34 }
  0x1c   : > { %v362_v2 = vsub.f32 %v1624_v20, %v361_v36  ;;  %v1316_v44 = vpack.c.bf16 %v347_v33, %v340_v25  ;;  %v389_v10 = vand.u32 4294901760, %v1660_v56 }
  0x1d   : > { %v376_v9 = vsub.f32 %v1640_v34, %v375_v43 }
  0x1e   : > { %1224 = vmatpush3.bf16.msra.mxu1 %v1541_v41  ;;  %1296 = vmatpush3.bf16.msra.mxu0 %v1541_v41  ;;  %v363_v8 = vand.u32 4294901760, %v362_v2  ;;  %v390_v22 = vsub.f32 %v1660_v56, %v389_v10 }
  0x1f   : > { %1225 = vmatprep.subr.bf16.mxu1 %v1380_v3  ;;  %1297 = vmatprep.subr.bf16.mxu0 %v1380_v3  ;;  %v377_v17 = vand.u32 4294901760, %v376_v9 }
  0x20   : > { %v391_v45 = vand.u32 4294901760, %v390_v22 }
  0x22   : > { %1227 = vmatpush3.bf16.msra.mxu1 %v1574_v53  ;;  %1299 = vmatpush3.bf16.msra.mxu0 %v1574_v53 }
  0x23   : > { %1228 = vmatprep.subr.bf16.mxu1 %v1380_v3  ;;  %1300 = vmatprep.subr.bf16.mxu0 %v1380_v3 }
  0x26   : > { %1230 = vmatpush3.bf16.msra.mxu1 %v1597_v63  ;;  %1302 = vmatpush3.bf16.msra.mxu0 %v1597_v63 }
  0x27   : > { %1231 = vmatprep.subr.bf16.mxu1 %v1380_v3  ;;  %1303 = vmatprep.subr.bf16.mxu0 %v1380_v3 }
  0x29   : > { %1030 = vmatmul.mubr.f32.vlgmr.msra.gmra.mrb[0].mxu1 %v275_v7  ;;  %1135 = vmatmul.mubr.f32.vlgmr.msra.gmra.mrb[0].mxu0 %v273_v51  ;;  %v1310_v51 = vpack.c.bf16 %v319_v62, %v312_v61  ;;  %v355_v61 = vsub.f32 %v1619_v19, %v354_v54  ;;  %v368_v62 = vand.u32 4294901760, %v1635_v28  ;;  %v1244_v7 = vpack.c.bf16 %v349_v1, %v342_v60 }
  0x2a   : > { %1233 = vmatpush3.bf16.msra.mxu1 %v1232_v14  ;;  %1305 = vmatpush3.bf16.msra.mxu0 %v1304_v6  ;;  %v382_v6 = vand.u32 4294901760, %v1655_v42  ;;  %v1319_v14 = vpack.c.bf16 %v361_v36, %v354_v54 }
  0x2b   : > { %1234 = vmatprep.subr.bf16.mxu1 %v1380_v3  ;;  %1306 = vmatprep.subr.bf16.mxu0 %v1380_v3  ;;  %v356_v49 = vand.u32 4294901760, %v355_v61  ;;  %v369_v50 = vsub.f32 %v1635_v28, %v368_v62  ;;  %v1322_v25 = vpack.c.bf16 %v375_v43, %v368_v62 }
  0x2c   : > { %1064 = vmatprep.mubr.msk.f32.mxu1 %vm1381_vm0, %v1382_v11  ;;  %1169 = vmatprep.mubr.msk.f32.mxu0 %vm1381_vm0, %v1382_v11  ;;  %v1325_v33 = vpack.c.bf16 %v389_v10, %v382_v6 }
  0x2d   : > { %v370_v15 = vand.u32 4294901760, %v369_v50  ;;  %v1247_v16 = vpack.c.bf16 %v363_v8, %v356_v49 }
  0x2e   : > { %1236 = vmatpush3.bf16.msra.mxu1 %v1235_v26  ;;  %1308 = vmatpush3.bf16.msra.mxu0 %v1307_v21  ;;  %v383_v21 = vsub.f32 %v1655_v42, %v382_v6 }
  0x2f   : > { %1237 = vmatprep.subr.bf16.mxu1 %v1380_v3  ;;  %1309 = vmatprep.subr.bf16.mxu0 %v1380_v3  ;;  %v1250_v24 = vpack.c.bf16 %v377_v17, %v370_v15 }
  0x30   : > { %v384_v26 = vand.u32 4294901760, %v383_v21 }
  0x32   : > { %1239 = vmatpush3.bf16.msra.mxu1 %v1238_v46  ;;  %1311 = vmatpush3.bf16.msra.mxu0 %v1310_v51  ;;  %v1253_v27 = vpack.c.bf16 %v391_v45, %v384_v26  ;;  %v1256_v46 = vpack.c.bf16 %v1507_v31, %v1503_v29  ;;  %v1259_v51 = vpack.c.bf16 %v1529_v38, %v1527_v37  ;;  %v892_v31 = vld [vmem:[%s1743_s2] ss:$0 sm:$0xff] }
  0x33   : > { %1240 = vmatprep.subr.bf16.mxu1 %v1380_v3  ;;  %1312 = vmatprep.subr.bf16.mxu0 %v1380_v3  ;;  %v1262_v29 = vpack.c.bf16 %v1562_v48, %v1559_v47 }
  0x36   : > { %1242 = vmatpush3.bf16.msra.mxu1 %v1241_v0  ;;  %1314 = vmatpush3.bf16.msra.mxu0 %v1313_v59 }
  0x37   : > { %1243 = vmatprep.subr.bf16.mxu1 %v1380_v3  ;;  %1315 = vmatprep.subr.bf16.mxu0 %v1380_v3 }
  0x3a   : > { %1245 = vmatpush3.bf16.msra.mxu1 %v1244_v7  ;;  %1317 = vmatpush3.bf16.msra.mxu0 %v1316_v44 }
  0x3b   : > { %1246 = vmatprep.subr.bf16.mxu1 %v1380_v3  ;;  %1318 = vmatprep.subr.bf16.mxu0 %v1380_v3 }
  0x3e   : > { %1248 = vmatpush3.bf16.msra.mxu1 %v1247_v16  ;;  %1320 = vmatpush3.bf16.msra.mxu0 %v1319_v14 }
  0x3f   : > { %1249 = vmatprep.subr.bf16.mxu1 %v1380_v3  ;;  %1321 = vmatprep.subr.bf16.mxu0 %v1380_v3 }
  0x42   : > { %1251 = vmatpush3.bf16.msra.mxu1 %v1250_v24  ;;  %1323 = vmatpush3.bf16.msra.mxu0 %v1322_v25 }
  0x43   : > { %1252 = vmatprep.subr.bf16.mxu1 %v1380_v3  ;;  %1324 = vmatprep.subr.bf16.mxu0 %v1380_v3 }
  0x46   : > { %1254 = vmatpush3.bf16.msra.mxu1 %v1253_v27  ;;  %1326 = vmatpush3.bf16.msra.mxu0 %v1325_v33 }
  0x47   : > { %1255 = vmatprep.subr.bf16.mxu1 %v1380_v3  ;;  %1327 = vmatprep.subr.bf16.mxu0 %v1380_v3 }
  0x49   : > { %1065 = vmatmul.mubr.f32.vlgmr.msra.gmra.mrb[0].mxu1 %v1505_v30  ;;  %1170 = vmatmul.mubr.f32.vlgmr.msra.gmra.mrb[0].mxu0 %v1505_v30 }
  0x4a   : > { %1257 = vmatpush3.bf16.msra.mxu1 %v1256_v46  ;;  %1329 = vmatpush3.bf16.msra.mxu0 %v1439_v12  ;;  %v1265_v12 = vpack.c.bf16 %v1585_v58, %v1582_v57 }
  0x4b   : > { %1258 = vmatprep.subr.bf16.mxu1 %v1380_v3  ;;  %1330 = vmatprep.subr.bf16.mxu0 %v1380_v3 }
  0x4c   : > { %1099 = vmatprep.mubr.msk.f32.mxu1 %vm1381_vm0, %v1382_v11  ;;  %1204 = vmatprep.mubr.msk.f32.mxu0 %vm1381_vm0, %v1382_v11  ;;  %v1268_v11 = vpack.c.bf16 %v1606_v5, %v1603_v4 }
  0x4e   : > { %1260 = vmatpush3.bf16.msra.mxu1 %v1259_v51  ;;  %1332 = vmatpush3.bf16.msra.mxu0 %v1443_v13  ;;  %v1271_v13 = vpack.c.bf16 %v1624_v20, %v1619_v19 }
  0x4f   : > { %1261 = vmatprep.subr.bf16.mxu1 %v1380_v3  ;;  %1333 = vmatprep.subr.bf16.mxu0 %v1380_v3 }
  0x52   : > { %1263 = vmatpush3.bf16.msra.mxu1 %v1262_v29  ;;  %1335 = vmatpush3.bf16.msra.mxu0 %v1464_v18  ;;  %v1274_v18 = vpack.c.bf16 %v1640_v34, %v1635_v28 }
  0x53   : > { %1264 = vmatprep.subr.bf16.mxu1 %v1380_v3  ;;  %1336 = vmatprep.subr.bf16.mxu0 %v1380_v3 }
  0x56   : > { %1266 = vmatpush3.bf16.msra.mxu1 %v1265_v12  ;;  %1338 = vmatpush3.bf16.msra.mxu0 %v1487_v23  ;;  %v1277_v23 = vpack.c.bf16 %v1660_v56, %v1655_v42 }
  0x57   : > { %1267 = vmatprep.subr.bf16.mxu1 %v1380_v3  ;;  %1339 = vmatprep.subr.bf16.mxu0 %v1380_v3 }
  0x5a   : > { %1269 = vmatpush3.bf16.msra.mxu1 %v1268_v11  ;;  %1341 = vmatpush3.bf16.msra.mxu0 %v1511_v32 }
  0x5b   : > { %1270 = vmatprep.subr.bf16.mxu1 %v1380_v3  ;;  %1342 = vmatprep.subr.bf16.mxu0 %v1380_v3 }
  0x5e   : > { %1272 = vmatpush3.bf16.msra.mxu1 %v1271_v13  ;;  %1344 = vmatpush3.bf16.msra.mxu0 %v1541_v41 }
  0x5f   : > { %1273 = vmatprep.subr.bf16.mxu1 %v1380_v3  ;;  %1345 = vmatprep.subr.bf16.mxu0 %v1380_v3 }
  0x62   : > { %1275 = vmatpush3.bf16.msra.mxu1 %v1274_v18  ;;  %1347 = vmatpush3.bf16.msra.mxu0 %v1574_v53 }
  0x63   : > { %1276 = vmatprep.subr.bf16.mxu1 %v1380_v3  ;;  %1348 = vmatprep.subr.bf16.mxu0 %v1380_v3 }
  0x66   : > { %1278 = vmatpush3.bf16.msra.mxu1 %v1277_v23  ;;  %1350 = vmatpush3.bf16.msra.mxu0 %v1597_v63 }
  0x69   : > { %1100 = vmatmul.mubr.f32.vlgmr.msra.gmra.mrb[0].mxu1 %v1533_v40  ;;  %1205 = vmatmul.mubr.f32.vlgmr.msra.gmra.mrb[0].mxu0 %v1505_v30 }
 0x13c   : > { %v532_v32 = vpop.f32.mrb[0].mxu1  ;;  %v827_v37 = vpop.f32.mrb[0].mxu0 }
 0x13d   : > { %v1351_v38 = vadd.f32 %v892_v31, %v532_v32  ;;  %v1101_v41 = vpop.f32.mrb[1].mxu1  ;;  %v1206_v47 = vpop.f32.mrb[1].mxu0 }
 0x13f   : > { %v1352_v3 = vadd.f32 %v1351_v38, %v827_v37 }
 0x141   : > { %831 = vst [vmem:[%s165_s29] sm:$0xff] %v1352_v3 }
 0x142 PF: > { %s13_s12 = sadd.s32 1, %s1378_s12  }
 0x143   : > { %p10_p4 = scmp.ge.s32.totalorder %s13_s12, 6  }
 0x145   :  { %12 = sbr.rel (!%p10_p4) target bundleno = 1 (0x1), region = 62 }

</bundles_post_ra>
